<compile_context>
chip_gen: v5e
topology: v5e:2x2
jax: 0.10.0
libtpu: 0.0.40
codegen_flags: <defaults>
</compile_context>

<pallas_src>
import functools

import jax
import jax.numpy as jnp
import numpy as np
from jax.experimental import pallas as pl
from jax.experimental.pallas import tpu as pltpu

_LANES = 128


def _grn_kernel(x_ref, gamma_ref, beta_ref, o_ref, *, eps, channels):
    """GRN on one folded block.

    x_ref:               (Nb, S, L)  with L = F * channels; lane l holds channel l % channels
    gamma_ref, beta_ref: (1, L)      channel params tiled F times along lanes
    o_ref:               (Nb, S, L)
    """
    x = x_ref[...]
    xf = x.astype(jnp.float32)

    # Per-lane sum of squares over the spatial (sublane) axis -> (Nb, 1, L).
    ss = jnp.sum(xf * xf, axis=1, keepdims=True)

    # Butterfly-fold the F lane groups (each of `channels` lanes) so that every
    # lane ends up holding the full per-channel sum (replicated F times).
    lanes = x.shape[-1]
    shift = lanes // 2
    while shift >= channels:  # static Python loop: log2(F) steps, none if F == 1
        ss = ss + pltpu.roll(ss, shift=shift, axis=2)
        shift //= 2

    gx = jnp.sqrt(ss)                                  # (Nb, 1, L): Gx[c = l % C] per lane
    mean_c = jnp.mean(gx, axis=-1, keepdims=True)      # (Nb, 1, 1): mean over channels
    nx = gx / (mean_c + eps)                           # (Nb, 1, L)

    # out = gamma*(x*Nx) + beta + x  ==  x * (1 + gamma*Nx) + beta
    scale = 1.0 + gamma_ref[...].astype(jnp.float32) * nx   # (Nb, 1, L)
    bias = beta_ref[...].astype(jnp.float32)                 # (1, L)

    o_ref[...] = (xf * scale + bias).astype(o_ref.dtype)


def grn_pallas(x, gamma, beta, eps=1e-6):
    """x: (N, H, W, C) NHWC; gamma, beta: (1, 1, 1, C) (any broadcastable-to-C shape)."""
    N, H, W, C = x.shape
    spatial = H * W

    # Fold spatial positions into lanes when C < 128 so blocks are lane-dense.
    if C % _LANES == 0:
        fold = 1
    elif _LANES % C == 0 and spatial % (_LANES // C) == 0:
        fold = _LANES // C
    else:
        fold = 1
    L = fold * C
    S = spatial // fold

    # Contiguous reinterpretations (no data movement in HBM).
    x3 = x.reshape(N, S, L)
    gamma2 = jnp.tile(gamma.reshape(1, C).astype(jnp.float32), (1, fold))  # (1, L)
    beta2 = jnp.tile(beta.reshape(1, C).astype(jnp.float32), (1, fold))    # (1, L)

    # Pack batch elements per grid step targeting ~1 MiB blocks (double-buffered
    # in+out stays well inside the default scoped VMEM of v5e/v6e/v7x).
    per_elem_bytes = S * L * x.dtype.itemsize
    cap = max(1, (1 << 20) // per_elem_bytes)
    nb = max(d for d in range(1, N + 1) if N % d == 0 and d <= cap)
    grid = (N // nb,)
    # TODO(synk): for very large single feature maps (one element >> VMEM budget,
    # relevant on v7x's 64 MiB) add a two-pass spatial split: reduce sum-of-squares
    # into an (N, C) scratch over an 'arbitrary' spatial grid axis, then apply.

    kernel = functools.partial(_grn_kernel, eps=eps, channels=C)

    out3 = pl.pallas_call(
        kernel,
        out_shape=jax.ShapeDtypeStruct((N, S, L), x.dtype),
        grid_spec=pltpu.PrefetchScalarGridSpec(
            num_scalar_prefetch=0,
            grid=grid,
            in_specs=[
                pl.BlockSpec((nb, S, L), lambda n: (n, 0, 0)),
                pl.BlockSpec((1, L), lambda n: (0, 0)),
                pl.BlockSpec((1, L), lambda n: (0, 0)),
            ],
            out_specs=pl.BlockSpec((nb, S, L), lambda n: (n, 0, 0)),
        ),
        compiler_params=pltpu.CompilerParams(
            dimension_semantics=("parallel",),
        ),
        cost_estimate=pl.CostEstimate(
            flops=4 * N * spatial * C,
            transcendentals=N * C,
            bytes_accessed=2 * N * spatial * C * x.dtype.itemsize + 2 * L * 4,
        ),
    )(x3, gamma2, beta2)

    return out3.reshape(N, H, W, C)


def grn_reference(x, gamma, beta, eps=1e-6):
    xf = x.astype(jnp.float32)
    gx = jnp.sqrt(jnp.sum(xf * xf, axis=(1, 2), keepdims=True))
    nx = gx / (jnp.mean(gx, axis=-1, keepdims=True) + eps)
    return (gamma * (xf * nx) + beta + xf).astype(x.dtype)


if __name__ == "__main__":
    # Small shapes consistent with the module: N=2, H=W=16, C(dim)=32.
    N, H, W, C = 2, 16, 16, 32
    key = jax.random.PRNGKey(0)
    kx, kg, kb = jax.random.split(key, 3)

    x = jax.random.normal(kx, (N, H, W, C), dtype=jnp.float32)
    # Module __init__ uses zeros for gamma/beta; use non-zero values so the
    # full compute path is exercised.
    gamma = 0.1 * jax.random.normal(kg, (1, 1, 1, C), dtype=jnp.float32)
    beta = 0.1 * jax.random.normal(kb, (1, 1, 1, C), dtype=jnp.float32)

    out = grn_pallas(x, gamma, beta)
    out = jax.block_until_ready(out)

    ref = grn_reference(x, gamma, beta)
    np.testing.assert_allclose(np.asarray(out), np.asarray(ref),
                               rtol=1e-5, atol=1e-5)
    print("KERNEL_OK")
</pallas_src>

<mosaic_0001>
module attributes {stable_mosaic.version = 11 : i64} {
  func.func @_grn_kernel(%arg0: i32, %arg1: memref<2x64x128xf32, #tpu.memory_space<vmem>>, %arg2: memref<1x128xf32, #tpu.memory_space<vmem>>, %arg3: memref<1x128xf32, #tpu.memory_space<vmem>>, %arg4: memref<2x64x128xf32, #tpu.memory_space<vmem>>) attributes {dimension_semantics = [#tpu.dimension_semantics<parallel>], iteration_bounds = array<i64: 1>, scalar_prefetch = 0 : i64, scratch_operands = 0 : i64, tpu.core_type = #tpu.core_type<tc>, window_params = [{transform_indices = @transform_0, window_bounds = array<i64: 2, 64, 128>}, {pipeline_mode = #tpu.pipeline_mode<synchronous>, transform_indices = @transform_1, window_bounds = array<i64: 1, 128>}, {pipeline_mode = #tpu.pipeline_mode<synchronous>, transform_indices = @transform_2, window_bounds = array<i64: 1, 128>}, {transform_indices = @transform_3, window_bounds = array<i64: 2, 64, 128>}]} {
    %c0 = arith.constant 0 : index
    %c0_0 = arith.constant 0 : index
    %c0_1 = arith.constant 0 : index
    %0 = vector.load %arg1[%c0, %c0_0, %c0_1] : memref<2x64x128xf32, #tpu.memory_space<vmem>>, vector<2x64x128xf32>
    %1 = arith.mulf %0, %0 : vector<2x64x128xf32>
    %cst = arith.constant dense<0.000000e+00> : vector<2x128xf32>
    %2 = vector.multi_reduction <add>, %1, %cst [1] : vector<2x64x128xf32> to vector<2x128xf32>
    %3 = vector.shape_cast %2 : vector<2x128xf32> to vector<2x1x128xf32>
    %c64_i32 = arith.constant 64 : i32
    %4 = tpu.dynamic_rotate %3 by %c64_i32 dim 2 : vector<2x1x128xf32>, i32 -> vector<2x1x128xf32>
    %5 = arith.addf %3, %4 : vector<2x1x128xf32>
    %c32_i32 = arith.constant 32 : i32
    %6 = tpu.dynamic_rotate %5 by %c32_i32 dim 2 : vector<2x1x128xf32>, i32 -> vector<2x1x128xf32>
    %7 = arith.addf %5, %6 : vector<2x1x128xf32>
    %8 = math.sqrt %7 : vector<2x1x128xf32>
    %cst_2 = arith.constant dense<0.000000e+00> : vector<2x1xf32>
    %9 = vector.multi_reduction <add>, %8, %cst_2 [2] : vector<2x1x128xf32> to vector<2x1xf32>
    %10 = vector.shape_cast %9 : vector<2x1xf32> to vector<2x1x1xf32>
    %cst_3 = arith.constant 1.280000e+02 : f32
    %11 = vector.broadcast %cst_3 : f32 to vector<2x1x1xf32>
    %12 = arith.divf %10, %11 : vector<2x1x1xf32>
    %cst_4 = arith.constant 9.99999997E-7 : f32
    %13 = vector.broadcast %cst_4 : f32 to vector<2x1x1xf32>
    %14 = arith.addf %12, %13 : vector<2x1x1xf32>
    %15 = vector.broadcast %14 : vector<2x1x1xf32> to vector<2x1x128xf32>
    %16 = arith.divf %8, %15 : vector<2x1x128xf32>
    %c0_5 = arith.constant 0 : index
    %c0_6 = arith.constant 0 : index
    %17 = vector.load %arg2[%c0_5, %c0_6] : memref<1x128xf32, #tpu.memory_space<vmem>>, vector<1x128xf32>
    %18 = vector.shape_cast %17 : vector<1x128xf32> to vector<1x1x128xf32>
    %19 = vector.broadcast %18 : vector<1x1x128xf32> to vector<2x1x128xf32>
    %20 = arith.mulf %19, %16 : vector<2x1x128xf32>
    %cst_7 = arith.constant 1.000000e+00 : f32
    %21 = vector.broadcast %cst_7 : f32 to vector<2x1x128xf32>
    %22 = arith.addf %21, %20 : vector<2x1x128xf32>
    %c0_8 = arith.constant 0 : index
    %c0_9 = arith.constant 0 : index
    %23 = vector.load %arg3[%c0_8, %c0_9] : memref<1x128xf32, #tpu.memory_space<vmem>>, vector<1x128xf32>
    %24 = vector.broadcast %22 : vector<2x1x128xf32> to vector<2x64x128xf32>
    %25 = arith.mulf %0, %24 : vector<2x64x128xf32>
    %26 = vector.shape_cast %23 : vector<1x128xf32> to vector<1x1x128xf32>
    %27 = vector.broadcast %26 : vector<1x1x128xf32> to vector<2x64x128xf32>
    %28 = arith.addf %25, %27 : vector<2x64x128xf32>
    %c0_10 = arith.constant 0 : index
    %c0_11 = arith.constant 0 : index
    %c0_12 = arith.constant 0 : index
    %29 = vector.load %arg4[%c0_10, %c0_11, %c0_12] : memref<2x64x128xf32, #tpu.memory_space<vmem>>, vector<2x64x128xf32>
    tpu.vector_store %arg4[%c0_10, %c0_11, %c0_12], %28 {strides = array<i32>} : memref<2x64x128xf32, #tpu.memory_space<vmem>>, vector<2x64x128xf32>,
    return
  }
  func.func @transform_0(%arg0: i32) -> (i32, i32, i32) {
    %c0_i32 = arith.constant 0 : i32
    %c0_i32_0 = arith.constant 0 : i32
    %c0_i32_1 = arith.constant 0 : i32
    return %arg0, %c0_i32, %c0_i32_0 : i32, i32, i32
  }
  func.func @transform_1(%arg0: i32) -> (i32, i32) {
    %c0_i32 = arith.constant 0 : i32
    %c0_i32_0 = arith.constant 0 : i32
    %c0_i32_1 = arith.constant 0 : i32
    return %c0_i32, %c0_i32_0 : i32, i32
  }
  func.func @transform_2(%arg0: i32) -> (i32, i32) {
    %c0_i32 = arith.constant 0 : i32
    %c0_i32_0 = arith.constant 0 : i32
    %c0_i32_1 = arith.constant 0 : i32
    return %c0_i32, %c0_i32_0 : i32, i32
  }
  func.func @transform_3(%arg0: i32) -> (i32, i32, i32) {
    %c0_i32 = arith.constant 0 : i32
    %c0_i32_0 = arith.constant 0 : i32
    %c0_i32_1 = arith.constant 0 : i32
    return %arg0, %c0_i32, %c0_i32_0 : i32, i32, i32
  }
}

</mosaic_0001>

<bundles_post_ra>
// kernel: tpu_custom_call.1
= control target key start
LH: loop header
LB: loop body
LE: loop exit
PB: predicated region body
PF: predicated region fallthrough
CT: control target
= control target key end

     0   :  { %8 = vsyncpa [#allocation3], 0  ;;  %s497_s0 = inlined_call_operand.hbm [shape: f32[2,64,128], index: 0, kind: input, shape index: {}]   ;;  %s498_s1 = inlined_call_operand.hbm [shape: f32[1,128], index: 1, kind: input, shape index: {}]   ;;  %s499_s2 = inlined_call_operand.vmem [shape: f32[1,128], index: 2, kind: input, shape index: {}]   ;;  %s500_s3 = inlined_call_operand.hbm [shape: f32[2,64,128], index: 3, kind: output, shape index: {}]  }
   0x1   :  { %9 = vsyncpa [#allocation6], 0 }
   0x2   :  { %10 = vsyncpa [#allocation4], 0  ;;  %s15_s14 = sshll.u32 %s497_s0, 4  ;;  %s367_s15 = smov [#allocation2]   ;;  %s16_s14 = int_to_ptr.hbm [resolvable:$true] %s15_s14 }
   0x3   :  { %s17_s16 = sshll.u32 %s367_s15, 4  ;;  %s29_s19 = sshll.u32 %s498_s1, 4  ;;  %s18_s16 = int_to_ptr.vmem [resolvable:$true] %s17_s16  ;;  %s30_s19 = int_to_ptr.hbm [resolvable:$true] %s29_s19 }
   0x4   :  { %s368_s20 = smov 128   ;;  %s369_s21 = smov 8  }
   0x5   :  { %23 = dma.hbm_to_vmem [thread:$0]  %s16_s14, 2048, %s18_s16, [#allocation3], %s368_s20, %s368_s20, %s369_s21  }
   0x6   :  { %s370_s22 = smov [#allocation5]  }
   0x7   :  { %s31_s23 = sshll.u32 %s370_s22, 4  ;;  %s32_s23 = int_to_ptr.vmem [resolvable:$true] %s31_s23 }
   0x8   :  { %34 = dma.hbm_to_vmem [thread:$0]  %s30_s19, 16, %s32_s23, [#allocation6]  }
   0x9   :  { %361 = dma.done.wait [#allocation3], 2048  }
   0xa   :  { %362 = vsyncadd [#allocation3], 4294965248 }
   0xb   :  { %363 = dma.done.wait [#allocation6], 16  }
   0xc   :  { %364 = vsyncadd [#allocation6], 4294967280  ;;  %v404_v0 = vld [vmem:[#allocation2] sm:$0xff]  ;;  %v406_v1 = vld [vmem:[#allocation2 + $0x8] sm:$0xff]  ;;  %s371_s0 = smov 64   ;;  %s372_s1 = smov 32  }
   0xd   :  { %v408_v2 = vld [vmem:[#allocation2 + $0x10] sm:$0xff]  ;;  %v410_v3 = vld [vmem:[#allocation2 + $0x18] sm:$0xff]  ;;  %v61_v4 = vmul.f32 %v404_v0, %v404_v0  ;;  %v62_v5 = vmul.f32 %v406_v1, %v406_v1  ;;  %v418_v7 = vld [vmem:[#allocation2 + $0x20] sm:$0xff]  ;;  %vm139_vm1 = vcmask 1040384   ;;  %s256_s29 = sshll.u32 %s500_s3, 4  ;;  %s257_s29 = int_to_ptr.hbm [resolvable:$true] %s256_s29 }
   0xe   :  { %v63_v6 = vmul.f32 %v408_v2, %v408_v2  ;;  %v420_v8 = vld [vmem:[#allocation2 + $0x40] sm:$0xff]  ;;  %v64_v9 = vmul.f32 %v410_v3, %v410_v3  ;;  %v424_v11 = vld [vmem:[#allocation2 + $0x48] sm:$0xff]  ;;  %v426_v12 = vld [vmem:[#allocation2 + $0x50] sm:$0xff]  ;;  %v65_v18 = vmul.f32 %v418_v7, %v418_v7 }
   0xf   :  { %v77_v10 = vadd.f32 %v62_v5, %v61_v4  ;;  %v428_v13 = vld [vmem:[#allocation2 + $0x58] sm:$0xff]  ;;  %v69_v14 = vmul.f32 %v420_v8, %v420_v8  ;;  %v432_v15 = vld [vmem:[#allocation2 + $0x28] sm:$0xff]  ;;  %v70_v16 = vmul.f32 %v424_v11, %v424_v11  ;;  %v71_v17 = vmul.f32 %v426_v12, %v426_v12  ;;  %v440_v20 = vld [vmem:[#allocation2 + $0x60] sm:$0xff] }
  0x10   :  { %v442_v21 = vld [vmem:[#allocation2 + $0x30] sm:$0xff]  ;;  %v72_v22 = vmul.f32 %v428_v13, %v428_v13  ;;  %v66_v24 = vmul.f32 %v432_v15, %v432_v15  ;;  %v448_v26 = vld [vmem:[#allocation2 + $0x68] sm:$0xff]  ;;  %v450_v27 = vld [vmem:[#allocation2 + $0x38] sm:$0xff]  ;;  %v73_v28 = vmul.f32 %v440_v20, %v440_v20 }
  0x11   :  { %v78_v19 = vadd.f32 %v77_v10, %v63_v6  ;;  %v90_v23 = vadd.f32 %v70_v16, %v69_v14  ;;  %v67_v30 = vmul.f32 %v442_v21, %v442_v21  ;;  %v456_v32 = vld [vmem:[#allocation2 + $0x70] sm:$0xff]  ;;  %v74_v33 = vmul.f32 %v448_v26, %v448_v26  ;;  %v462_v37 = vld [vmem:[#allocation2 + $0x78] sm:$0xff] }
  0x12   :  { %v68_v35 = vmul.f32 %v450_v27, %v450_v27  ;;  %v75_v38 = vmul.f32 %v456_v32, %v456_v32  ;;  %v76_v41 = vmul.f32 %v462_v37, %v462_v37 }
  0x13   :  { %v79_v25 = vadd.f32 %v78_v19, %v64_v9  ;;  %v91_v29 = vadd.f32 %v90_v23, %v71_v17 }
  0x15   :  { %v80_v31 = vadd.f32 %v79_v25, %v65_v18  ;;  %v92_v34 = vadd.f32 %v91_v29, %v72_v22 }
  0x17   :  { %v81_v36 = vadd.f32 %v80_v31, %v66_v24  ;;  %v93_v39 = vadd.f32 %v92_v34, %v73_v28 }
  0x19   :  { %v82_v40 = vadd.f32 %v81_v36, %v67_v30  ;;  %v94_v42 = vadd.f32 %v93_v39, %v74_v33 }
  0x1b   :  { %v83_v43 = vadd.f32 %v82_v40, %v68_v35  ;;  %v95_v44 = vadd.f32 %v94_v42, %v75_v38  ;;  %v373_v40 = vmov 128.0  }
  0x1d   :  { %v84_v45 = vrot.slane %v83_v43, 4  ;;  %v96_v46 = vadd.f32 %v95_v44, %v76_v41 }
  0x1f   :  { %v85_v47 = vadd.f32 %v84_v45, %v83_v43  ;;  %v97_v48 = vrot.slane %v96_v46, 4 }
  0x21   :  { %v86_v49 = vrot.slane %v85_v47, 2  ;;  %v98_v50 = vadd.f32 %v97_v48, %v96_v46 }
  0x23   :  { %v87_v51 = vadd.f32 %v86_v49, %v85_v47  ;;  %v99_v52 = vrot.slane %v98_v50, 2 }
  0x25   :  { %v88_v53 = vrot.slane %v87_v51, 1  ;;  %v100_v54 = vadd.f32 %v99_v52, %v98_v50 }
  0x27   :  { %v89_v55 = vadd.f32 %v88_v53, %v87_v51  ;;  %v101_v56 = vrot.slane %v100_v54, 1 }
  0x29   :  { %103 = vrot.lane.b32.xlu0 %v89_v55, %s371_s0  ;;  %v102_v57 = vadd.f32 %v101_v56, %v100_v54 }
  0x31   :  { %105 = vrot.lane.b32.xlu0 %v102_v57, %s371_s0 }
  0x9b   :  { %v104_v58 = vpop.permute.xlu0 %103 }
  0x9c   :  { %v107_v59 = vadd.f32 %v104_v58, %v89_v55 }
  0x9e   :  { %109 = vrot.lane.b32.xlu1 %v107_v59, %s372_s1 }
  0xa3   :  { %v106_v60 = vpop.permute.xlu0 %105 }
  0xa4   :  { %v108_v61 = vadd.f32 %v106_v60, %v102_v57 }
  0xa6   :  { %111 = vrot.lane.b32.xlu1 %v108_v61, %s372_s1 }
 0x110   :  { %v110_v62 = vpop.permute.xlu1 %109 }
 0x111   :  { %v113_v63 = vadd.f32 %v110_v62, %v107_v59 }
 0x113   :  { %279 = vrsqrt.f32 %v113_v63  ;;  %vm122_vm0 = vcmp.eq.f32.partialorder %v113_v63, inf  ;;  %v125_v24 = vand.u32 2147483648, %v113_v63  ;;  %vm124_vm2 = vcmp.eq.f32.partialorder %v113_v63, 0.0 }
 0x118   :  { %v112_v4 = vpop.permute.xlu1 %111 }
 0x119   :  { %v280_v5 = vpop.eup %279  ;;  %v114_v6 = vadd.f32 %v112_v4, %v108_v61  ;;  %v187_v4 = vld [vmem:[#allocation5] sm:$0x1] }
 0x11a   :  { %v116_v9 = vmul.f32 %v280_v5, %v113_v63 }
 0x11b   :  { %281 = vrsqrt.f32 %v114_v6  ;;  %vm134_vm3 = vcmp.eq.f32.partialorder %v114_v6, inf  ;;  %v137_v35 = vand.u32 2147483648, %v114_v6  ;;  %vm136_vm4 = vcmp.eq.f32.partialorder %v114_v6, 0.0 }
 0x11c   :  { %v117_v10 = vmul.f32 %v280_v5, %v116_v9  ;;  %283 = vrcp.f32 %v373_v40 }
 0x11e   :  { %v118_v14 = vmul.f32 0.5, %v117_v10 }
 0x120   :  { %v119_v16 = vsub.f32 1.5, %v118_v14 }
 0x121   :  { %v282_v17 = vpop.eup %281 }
 0x122   :  { %v120_v18 = vmul.f32 %v280_v5, %v119_v16  ;;  %v128_v19 = vmul.f32 %v282_v17, %v114_v6  ;;  %v284_v41 = vpop.eup %283 }
 0x123   :  { %v147_v42 = vmul.f32 128.0, %v284_v41  ;;  %vm151_vm5 = vweird.f32 %v284_v41 }
 0x124   :  { %v121_v22 = vmul.f32 %v120_v18, %v113_v63  ;;  %v129_v23 = vmul.f32 %v282_v17, %v128_v19 }
 0x125   :  { %v148_v43 = vsub.f32 1.0, %v147_v42 }
 0x126   :  { %v123_v25 = vsel %vm122_vm0, %v113_v63, %v121_v22  ;;  %v130_v28 = vmul.f32 0.5, %v129_v23  ;;  %v278_v22 = vld [vmem:[%s499_s2] ss:$0 sm:$0xff]  ;;  %s374_s2 = smov [#allocation7]  }
 0x127   :  { %v126_v29 = vsel %vm124_vm2, %v125_v24, %v123_v25  ;;  %v149_v44 = vmul.f32 %v284_v41, %v148_v43  ;;  %s254_s26 = sshll.u32 %s374_s2, 4  ;;  %s255_s26 = int_to_ptr.vmem [resolvable:$true] %s254_s26 }
 0x128   :  { %v140_v30 = vsel %vm139_vm1, %v126_v29, 0.0  ;;  %v131_v31 = vsub.f32 1.5, %v130_v28 }
 0x129   :  { %141 = vadd.xlane.f32.xlu2 %v140_v30  ;;  %v150_v45 = vadd.f32 %v284_v41, %v149_v44 }
 0x12a   :  { %v132_v33 = vmul.f32 %v282_v17, %v131_v31 }
 0x12b   :  { %v152_v46 = vsel %vm151_vm5, %v284_v41, %v150_v45 }
 0x12c   :  { %v133_v34 = vmul.f32 %v132_v33, %v114_v6 }
 0x12e   :  { %v135_v36 = vsel %vm134_vm3, %v114_v6, %v133_v34 }
 0x12f   :  { %v468_v38 = vsel %vm136_vm4, %v137_v35, %v135_v36 }
 0x130   :  { %v143_v39 = vsel %vm139_vm1, %v468_v38, 0.0 }
 0x131   :  { %144 = vadd.xlane.f32.xlu2 %v143_v39 }
 0x19c   :  { %v142_v47 = vpop.xlane.xlu2 %141 }
 0x19d   :  { %v153_v48 = vmul.f32 %v152_v46, %v142_v47 }
 0x19f   :  { %v155_v49 = vadd.f32 1e-06, %v153_v48 }
 0x1a1   :  { %285 = vrcp.f32 %v155_v49  ;;  %v168_v56 = vand.u32 2147483648, %v155_v49  ;;  %v166_v58 = vand.u32 2147483647, %v155_v49  ;;  %vm162_vm7 = vweird.f32 %v155_v49 }
 0x1a3   :  { %v169_v61 = vor.u32 1.1754944e-38, %v168_v56  ;;  %vm167_vm9 = vcmp.eq.f32.partialorder %v166_v58, 8.507059e+37 }
 0x1a4   :  { %v145_v50 = vpop.xlane.xlu2 %144 }
 0x1a5   :  { %v154_v51 = vmul.f32 %v152_v46, %v145_v50 }
 0x1a7   :  { %v286_v52 = vpop.eup %285  ;;  %v156_v53 = vadd.f32 1e-06, %v154_v51 }
 0x1a8   :  { %v158_v54 = vmul.f32 %v286_v52, %v155_v49  ;;  %vm163_vm6 = vweird.f32 %v286_v52 }
 0x1a9   :  { %287 = vrcp.f32 %v156_v53  ;;  %vm164_vm8 = vmor %vm162_vm7, %vm163_vm6  ;;  %v181_v16 = vand.u32 2147483647, %v156_v53  ;;  %v183_v17 = vand.u32 2147483648, %v156_v53  ;;  %vm177_vm11 = vweird.f32 %v156_v53 }
 0x1aa   :  { %v159_v55 = vsub.f32 1.0, %v158_v54 }
 0x1ab   :  { %vm182_vm13 = vcmp.eq.f32.partialorder %v181_v16, 8.507059e+37  ;;  %v184_v25 = vor.u32 1.1754944e-38, %v183_v17 }
 0x1ac   :  { %v160_v57 = vmul.f32 %v286_v52, %v159_v55 }
 0x1ae   :  { %v161_v59 = vadd.f32 %v286_v52, %v160_v57 }
 0x1af   :  { %v288_v60 = vpop.eup %287 }
 0x1b0   :  { %v165_v62 = vsel %vm164_vm8, %v286_v52, %v161_v59  ;;  %v173_v63 = vmul.f32 %v288_v60, %v156_v53  ;;  %vm178_vm10 = vweird.f32 %v288_v60 }
 0x1b1   :  { %v170_v5 = vsel %vm167_vm9, %v169_v61, %v165_v62  ;;  %vm179_vm12 = vmor %vm177_vm11, %vm178_vm10 }
 0x1b2   :  { %v171_v6 = vmul.f32 %v170_v5, %v126_v29  ;;  %v174_v9 = vsub.f32 1.0, %v173_v63 }
 0x1b4   :  { %v188_v10 = vmul.f32 %v187_v4, %v171_v6  ;;  %v175_v14 = vmul.f32 %v288_v60, %v174_v9 }
 0x1b6   :  { %v190_v18 = vadd.f32 1.0, %v188_v10  ;;  %v176_v19 = vadd.f32 %v288_v60, %v175_v14 }
 0x1b8   :  { %v195_v23 = vperm.slane %v190_v18, 0  ;;  %v180_v24 = vsel %vm179_vm12, %v288_v60, %v176_v19 }
 0x1b9   :  { %v185_v35 = vsel %vm182_vm13, %v184_v25, %v180_v24 }
 0x1ba   :  { %v199_v28 = vmul.f32 %v195_v23, %v404_v0  ;;  %v200_v29 = vmul.f32 %v195_v23, %v406_v1  ;;  %v201_v30 = vmul.f32 %v195_v23, %v408_v2  ;;  %v202_v31 = vmul.f32 %v195_v23, %v410_v3 }
 0x1bb   :  { %v203_v33 = vmul.f32 %v195_v23, %v418_v7  ;;  %v204_v34 = vmul.f32 %v195_v23, %v432_v15  ;;  %v205_v36 = vmul.f32 %v195_v23, %v442_v21  ;;  %v206_v42 = vmul.f32 %v195_v23, %v450_v27 }
 0x1bc   :  { %v218_v39 = vadd.f32 %v278_v22, %v199_v28  ;;  %v219_v40 = vadd.f32 %v278_v22, %v200_v29  ;;  %v220_v41 = vadd.f32 %v278_v22, %v201_v30  ;;  %v221_v43 = vadd.f32 %v278_v22, %v202_v31 }
 0x1bd   :  { %v222_v0 = vadd.f32 %v278_v22, %v203_v33  ;;  %v186_v1 = vmul.f32 %v185_v35, %v468_v38  ;;  %v223_v2 = vadd.f32 %v278_v22, %v204_v34  ;;  %v224_v3 = vadd.f32 %v278_v22, %v205_v36 }
 0x1be   :  { %234 = vst [vmem:[#allocation7] sm:$0xff] %v218_v39  ;;  %v225_v44 = vadd.f32 %v278_v22, %v206_v42 }
 0x1bf   :  { %235 = vst [vmem:[#allocation7 + $0x8] sm:$0xff] %v219_v40  ;;  %v189_v7 = vmul.f32 %v187_v4, %v186_v1 }
 0x1c0   :  { %236 = vst [vmem:[#allocation7 + $0x10] sm:$0xff] %v220_v41 }
 0x1c1   :  { %237 = vst [vmem:[#allocation7 + $0x18] sm:$0xff] %v221_v43  ;;  %v191_v15 = vadd.f32 1.0, %v189_v7 }
 0x1c2   :  { %238 = vst [vmem:[#allocation7 + $0x20] sm:$0xff] %v222_v0 }
 0x1c3   :  { %239 = vst [vmem:[#allocation7 + $0x28] sm:$0xff] %v223_v2  ;;  %v196_v21 = vperm.slane %v191_v15, 0 }
 0x1c4   :  { %240 = vst [vmem:[#allocation7 + $0x30] sm:$0xff] %v224_v3 }
 0x1c5   :  { %241 = vst [vmem:[#allocation7 + $0x38] sm:$0xff] %v225_v44  ;;  %v207_v27 = vmul.f32 %v196_v21, %v420_v8  ;;  %v208_v45 = vmul.f32 %v196_v21, %v424_v11  ;;  %v209_v46 = vmul.f32 %v196_v21, %v426_v12  ;;  %v210_v38 = vmul.f32 %v196_v21, %v428_v13 }
 0x1c6   :  { %v211_v47 = vmul.f32 %v196_v21, %v440_v20  ;;  %v212_v48 = vmul.f32 %v196_v21, %v448_v26  ;;  %v213_v49 = vmul.f32 %v196_v21, %v456_v32  ;;  %v214_v53 = vmul.f32 %v196_v21, %v462_v37 }
 0x1c7   :  { %v226_v50 = vadd.f32 %v278_v22, %v207_v27  ;;  %v227_v51 = vadd.f32 %v278_v22, %v208_v45  ;;  %v228_v52 = vadd.f32 %v278_v22, %v209_v46  ;;  %v229_v54 = vadd.f32 %v278_v22, %v210_v38 }
 0x1c8   :  { %v230_v55 = vadd.f32 %v278_v22, %v211_v47  ;;  %v231_v8 = vadd.f32 %v278_v22, %v212_v48  ;;  %v232_v11 = vadd.f32 %v278_v22, %v213_v49  ;;  %v233_v12 = vadd.f32 %v278_v22, %v214_v53 }
 0x1c9   :  { %242 = vst [vmem:[#allocation7 + $0x40] sm:$0xff] %v226_v50 }
 0x1ca   :  { %243 = vst [vmem:[#allocation7 + $0x48] sm:$0xff] %v227_v51 }
 0x1cb   :  { %244 = vst [vmem:[#allocation7 + $0x50] sm:$0xff] %v228_v52 }
 0x1cc   :  { %245 = vst [vmem:[#allocation7 + $0x58] sm:$0xff] %v229_v54 }
 0x1cd   :  { %246 = vst [vmem:[#allocation7 + $0x60] sm:$0xff] %v230_v55 }
 0x1ce   :  { %247 = vst [vmem:[#allocation7 + $0x68] sm:$0xff] %v231_v8 }
 0x1cf   :  { %248 = vst [vmem:[#allocation7 + $0x70] sm:$0xff] %v232_v11 }
 0x1d0   :  { %249 = vst [vmem:[#allocation7 + $0x78] sm:$0xff] %v233_v12 }
 0x1d1   :  { %262 = dma.vmem_to_hbm [thread:$0]  %s255_s26, 2048, %s257_s29, [#allocation4], %s368_s20, %s368_s20, %s369_s21  }
 0x1d2   :  { %365 = dma.done.wait [#allocation4], 2048  }
 0x1d3   :  { %366 = vsyncadd [#allocation4], 4294965248 }
 0x1d4   :  { %267 = vsyncpa [#allocation3], 1 }
 0x1d5   :  { %268 = vsyncpa [#allocation6], 1 }
 0x1d6   :  { %269 = vsyncpa [#allocation4], 1 }

</bundles_post_ra>
